<compile_context>
chip_gen: v7x
topology: tpu7x:2x2x1
jax: 0.10.0
libtpu: 0.0.40
codegen_flags: <defaults>
</compile_context>

<pallas_src>
import dataclasses
from typing import Any, Optional

import jax
import jax.numpy as jnp
from jax.experimental import pallas as pl
from jax.experimental.pallas import tpu as pltpu


_LANE = 128        # lane width (last-dim tiling quantum)
_SUBLANE_F32 = 8   # f32 sublane quantum (second-to-last dim)
_SUBLANE_BF16 = 16  # bf16 packs 2 rows / sublane


def _round_up(v, m):
    return (v + m - 1) // m * m


def _cdiv(a, b):
    return (a + b - 1) // b


def _physical_vmem_bytes():
    """Per-generation VMEM capacity (v5e/v6e 128 MiB, v7x 64 MiB); conservative fallback."""
    try:
        info = pltpu.get_tpu_info()
        for name in ("vmem_capacity_bytes", "vmem_size_bytes", "vmem_bytes"):
            v = getattr(info, name, None)
            if isinstance(v, int) and v > 0:
                return v
    except Exception:
        pass
    return 64 * 1024 * 1024  # v7x-safe conservative default


# --------------------------------------------------------------------------- kernels
def _linear_relu_kernel(x_ref, w_ref, b_ref, o_ref):
    # x_ref: (TB, K)  w_ref: (K, N)  b_ref: (1, N) f32  o_ref: (TB, N)
    acc = jnp.dot(x_ref[...], w_ref[...], preferred_element_type=jnp.float32)
    o_ref[...] = jnp.maximum(acc + b_ref[...], 0.0).astype(o_ref.dtype)


def _linear_relu_ksplit_kernel(x_ref, w_ref, b_ref, o_ref, acc_ref):
    # Grid: (batch tiles [parallel], K tiles [arbitrary, last]); f32 accumulator scratch.
    k = pl.program_id(1)

    @pl.when(k == 0)
    def _():
        acc_ref[...] = jnp.zeros_like(acc_ref)

    acc_ref[...] += jnp.dot(x_ref[...], w_ref[...], preferred_element_type=jnp.float32)

    @pl.when(k == pl.num_programs(1) - 1)
    def _():
        o_ref[...] = jnp.maximum(acc_ref[...] + b_ref[...], 0.0).astype(o_ref.dtype)


# --------------------------------------------------------------------------- params
@dataclasses.dataclass(eq=False)
class ClassifierParams:
    wp: Any           # (K, N) padded weight, in_dtype
    bp: Any           # (1, N) padded bias, f32
    x_dim: int
    y_dim: int
    K: int
    N: int
    in_dtype: Any
    tile_k: Optional[int]   # None => resident-weight path


def prepare_classifier_params(w, b, *, use_bf16=False, force_k_split=False,
                              tile_k=None, vmem_budget_bytes=None):
    """Pad / cast the static fc1 parameters once (not per forward call).

    w: [x_dim, y_dim] float (PyTorch nn.Linear weight is [y_dim, x_dim]; pass weight.T)
    b: [y_dim] float
    """
    x_dim, y_dim = w.shape
    assert b.shape == (y_dim,)
    in_dtype = jnp.bfloat16 if use_bf16 else jnp.float32
    in_bytes = jnp.dtype(in_dtype).itemsize

    if vmem_budget_bytes is None:
        vmem_budget_bytes = int(_physical_vmem_bytes() * 0.45)

    # Lane-dense output stores: pad N (classes) to a lane multiple.
    N = _round_up(y_dim, _LANE)
    # Only pad K when it is large AND misaligned; a small K stays full-dim (legal block
    # shape) so x HBM read traffic is not inflated for tiny feature dims.
    K_lane = x_dim if x_dim <= _LANE else _round_up(x_dim, _LANE)

    w_bytes = K_lane * N * in_bytes
    use_k_split = force_k_split or (w_bytes > vmem_budget_bytes // 2)

    if use_k_split:
        K128 = _round_up(x_dim, _LANE)
        if tile_k is None:
            # Fit the double-buffered (tile_k, N) weight slab in ~1/4 of the budget.
            tk = (vmem_budget_bytes // 4) // max(1, 2 * N * in_bytes)
            tile_k = max(_LANE, min(2048, tk // _LANE * _LANE))
        tile_k = min(_round_up(tile_k, _LANE), K128)
        K = _round_up(K128, tile_k)
    else:
        tile_k = None
        K = K_lane

    if K == x_dim and N == y_dim:
        wp = w.astype(in_dtype)
    else:
        wp = jnp.zeros((K, N), in_dtype).at[:x_dim, :y_dim].set(w.astype(in_dtype))
    if N == y_dim:
        bp = b.astype(jnp.float32).reshape(1, N)
    else:
        bp = jnp.zeros((1, N), jnp.float32).at[0, :y_dim].set(b.astype(jnp.float32))

    return ClassifierParams(wp=wp, bp=bp, x_dim=x_dim, y_dim=y_dim, K=K, N=N,
                            in_dtype=in_dtype, tile_k=tile_k)


# --------------------------------------------------------------------------- forward
def classifier_forward(x, params: ClassifierParams, *, tile_b=None, out_dtype=None,
                       vmem_budget_bytes=None, fallback_flops_threshold=None):
    """relu(x @ w + b) via a Pallas TPU kernel.  x: [B, x_dim]."""
    B, x_dim = x.shape
    assert x_dim == params.x_dim
    out_dtype = x.dtype if out_dtype is None else out_dtype

    # Tiny-problem guard: below the threshold a fused XLA matmul beats launch overhead.
    if (fallback_flops_threshold is not None
            and 2 * B * x_dim * params.y_dim < fallback_flops_threshold):
        y = (x.astype(params.in_dtype) @ params.wp[:x_dim, :params.y_dim]
             + params.bp[0, :params.y_dim])
        return jnp.maximum(y, 0.0).astype(out_dtype)

    K, N, tile_k = params.K, params.N, params.tile_k
    in_dtype = params.in_dtype
    in_bytes = jnp.dtype(in_dtype).itemsize
    out_bytes = jnp.dtype(out_dtype).itemsize

    phys_vmem = _physical_vmem_bytes()
    if vmem_budget_bytes is None:
        vmem_budget_bytes = int(phys_vmem * 0.45)
    vmem_limit_bytes = min(int(phys_vmem * 0.70), 100 * 1024 * 1024)

    row_q = _SUBLANE_BF16 if jnp.dtype(in_dtype) == jnp.dtype(jnp.bfloat16) else _SUBLANE_F32
    B8 = _round_up(B, row_q)

    def footprint(tb):
        if tile_k is None:
            w_res = K * N * in_bytes + N * 4          # single-buffered (constant index map)
            x_buf = 2 * tb * K * in_bytes
            acc = 0
        else:
            w_res = 2 * tile_k * N * in_bytes + N * 4  # weight tiles double-buffered over K
            x_buf = 2 * tb * tile_k * in_bytes
            acc = tb * N * 4
        o_buf = 2 * tb * N * out_bytes
        return w_res + x_buf + o_buf + acc

    if tile_b is None:
        if B8 < 2 * row_q:
            tile_b = B8
        else:
            tile_b = min(1024, _round_up(_cdiv(B8, 2), row_q))
    tile_b = max(row_q, _round_up(tile_b, row_q))
    while tile_b > row_q and footprint(tile_b) > vmem_budget_bytes:
        tile_b = max(row_q, _round_up(tile_b // 2, row_q))

    # Keep the batch step count >= 2 and even so v7x's 2 TensorCores stay balanced.
    steps = _cdiv(B8, tile_b)
    if steps > 1 and steps % 2 == 1:
        t2 = max(row_q, _round_up(_cdiv(B8, steps + 1), row_q))
        if t2 < tile_b:
            tile_b = t2
    B_pad = _round_up(B8, tile_b)

    # x fast path: skip the pad copy entirely when already aligned.
    if B_pad == B and K == x_dim:
        xp = x.astype(in_dtype)
    else:
        xp = jnp.zeros((B_pad, K), in_dtype).at[:B, :x_dim].set(x.astype(in_dtype))

    cost = pl.CostEstimate(
        flops=2 * B_pad * K * N,
        transcendentals=0,
        bytes_accessed=(B_pad * K * in_bytes + K * N * in_bytes + N * 4
                        + B_pad * N * out_bytes),
    )

    def build_and_run(single_buffer_params):
        const_pipe = dict(pipeline_mode=pl.Buffered(1)) if single_buffer_params else {}
        if tile_k is None:
            grid = (B_pad // tile_b,)
            in_specs = [
                pl.BlockSpec((tile_b, K), lambda i: (i, 0)),             # x tile, pipelined
                pl.BlockSpec((K, N), lambda i: (0, 0), **const_pipe),    # resident weight
                pl.BlockSpec((1, N), lambda i: (0, 0), **const_pipe),    # resident bias
            ]
            out_specs = pl.BlockSpec((tile_b, N), lambda i: (i, 0))
            scratch = []
            kernel = _linear_relu_kernel
            sem = ("parallel",)
        else:
            grid = (B_pad // tile_b, K // tile_k)
            in_specs = [
                pl.BlockSpec((tile_b, tile_k), lambda i, k: (i, k)),
                pl.BlockSpec((tile_k, N), lambda i, k: (k, 0)),
                pl.BlockSpec((1, N), lambda i, k: (0, 0), **const_pipe),
            ]
            out_specs = pl.BlockSpec((tile_b, N), lambda i, k: (i, 0))
            scratch = [pltpu.VMEM((tile_b, N), jnp.float32)]
            kernel = _linear_relu_ksplit_kernel
            sem = ("parallel", "arbitrary")

        return pl.pallas_call(
            kernel,
            out_shape=jax.ShapeDtypeStruct((B_pad, N), out_dtype),
            grid_spec=pltpu.PrefetchScalarGridSpec(
                num_scalar_prefetch=0,
                grid=grid,
                in_specs=in_specs,
                out_specs=out_specs,
                scratch_shapes=scratch,
            ),
            compiler_params=pltpu.CompilerParams(
                dimension_semantics=sem,
                vmem_limit_bytes=vmem_limit_bytes,
            ),
            cost_estimate=cost,
        )(xp, params.wp, params.bp)

    try:
        out = build_and_run(True)
    except Exception:
        # pipeline_mode / Buffered(1) unsupported on this jax version: default buffering.
        out = build_and_run(False)

    return out[:B, :params.y_dim]


# TODO(synk): training machinery (Adam, LR scheduler, CrossEntropyLoss, checkpoint I/O,
# class_accuracy) is host-side PyTorch plumbing with no kernel equivalent; only forward()
# is implemented here.

if __name__ == "__main__":
    key = jax.random.PRNGKey(0)
    kx, kw, kb, kx2, kw2, kb2 = jax.random.split(key, 6)

    # Small shapes consistent with Classifier: x_dim (visual features), y_dim (classes).
    B, X_DIM, Y_DIM = 64, 32, 16
    x = jax.random.normal(kx, (B, X_DIM), dtype=jnp.float32)
    w_t = 0.02 * jax.random.normal(kw, (Y_DIM, X_DIM), dtype=jnp.float32)  # torch [y, x]
    b = 0.02 * jax.random.normal(kb, (Y_DIM,), dtype=jnp.float32)
    ref = jnp.maximum(x @ w_t.T + b, 0.0)

    # f32 resident-weight path (default module semantics); x takes the no-pad fast path.
    params = prepare_classifier_params(w_t.T, b)
    out = jax.block_until_ready(classifier_forward(x, params))
    assert out.shape == (B, Y_DIM)
    assert jnp.allclose(out, ref, atol=1e-5, rtol=1e-5)

    # bf16-input path (halves x/w HBM traffic; f32 accumulate + bias + ReLU).
    params_bf16 = prepare_classifier_params(w_t.T, b, use_bf16=True)
    out_bf16 = jax.block_until_ready(classifier_forward(x, params_bf16))
    assert out_bf16.shape == (B, Y_DIM)
    assert jnp.allclose(out_bf16, ref, atol=1e-2, rtol=1e-2)

    # K-split path (auto-enabled when the weight exceeds ~half the VMEM budget; forced
    # here at small shapes so the accumulator init/accumulate/finalize path is exercised).
    B2, X2, Y2 = 128, 384, 256
    x2 = jax.random.normal(kx2, (B2, X2), dtype=jnp.float32)
    w2 = 0.02 * jax.random.normal(kw2, (X2, Y2), dtype=jnp.float32)
    b2 = 0.02 * jax.random.normal(kb2, (Y2,), dtype=jnp.float32)
    ref2 = jnp.maximum(x2 @ w2 + b2, 0.0)
    params2 = prepare_classifier_params(w2, b2, force_k_split=True, tile_k=128)
    out2 = jax.block_until_ready(classifier_forward(x2, params2))
    assert out2.shape == (B2, Y2)
    assert jnp.allclose(out2, ref2, atol=1e-2, rtol=1e-2)

    # Tiny-problem XLA fallback guard (no Pallas launch below the FLOP threshold).
    out_fb = jax.block_until_ready(
        classifier_forward(x, params, fallback_flops_threshold=1 << 30))
    assert jnp.allclose(out_fb, ref, atol=1e-5, rtol=1e-5)

    print("KERNEL_OK")
</pallas_src>

<mosaic_0001>
module attributes {stable_mosaic.version = 11 : i64} {
  func.func @_linear_relu_kernel(%arg0: i32, %arg1: memref<32x32xf32, #tpu.memory_space<vmem>>, %arg2: memref<32x128xf32, #tpu.memory_space<vmem>>, %arg3: memref<1x128xf32, #tpu.memory_space<vmem>>, %arg4: memref<32x128xf32, #tpu.memory_space<vmem>>) attributes {dimension_semantics = [#tpu.dimension_semantics<parallel>], iteration_bounds = array<i64: 2>, scalar_prefetch = 0 : i64, scratch_operands = 0 : i64, tpu.core_type = #tpu.core_type<tc>, window_params = [{transform_indices = @transform_0, window_bounds = array<i64: 32, 32>}, {pipeline_mode = #tpu.pipeline_mode<synchronous>, transform_indices = @transform_1, window_bounds = array<i64: 32, 128>}, {pipeline_mode = #tpu.pipeline_mode<synchronous>, transform_indices = @transform_2, window_bounds = array<i64: 1, 128>}, {transform_indices = @transform_3, window_bounds = array<i64: 32, 128>}]} {
    %c0 = arith.constant 0 : index
    %c0_0 = arith.constant 0 : index
    %0 = vector.load %arg1[%c0, %c0_0] : memref<32x32xf32, #tpu.memory_space<vmem>>, vector<32x32xf32>
    %c0_1 = arith.constant 0 : index
    %c0_2 = arith.constant 0 : index
    %1 = vector.load %arg2[%c0_1, %c0_2] : memref<32x128xf32, #tpu.memory_space<vmem>>, vector<32x128xf32>
    %cst = arith.constant dense<0.000000e+00> : vector<32x128xf32>
    %2 = tpu.matmul %0, %1, %cst {dimension_numbers = #tpu.dot_dimension_numbers<[1], [0], [0], [1], [0, 0, 1, 1], [], []>} : vector<32x32xf32>, vector<32x128xf32>, vector<32x128xf32> -> vector<32x128xf32>
    %c0_3 = arith.constant 0 : index
    %c0_4 = arith.constant 0 : index
    %3 = vector.load %arg3[%c0_3, %c0_4] : memref<1x128xf32, #tpu.memory_space<vmem>>, vector<1x128xf32>
    %4 = vector.broadcast %3 : vector<1x128xf32> to vector<32x128xf32>
    %5 = arith.addf %2, %4 : vector<32x128xf32>
    %cst_5 = arith.constant 0.000000e+00 : f32
    %6 = vector.broadcast %cst_5 : f32 to vector<32x128xf32>
    %7 = arith.maximumf %5, %6 : vector<32x128xf32>
    %c0_6 = arith.constant 0 : index
    %c0_7 = arith.constant 0 : index
    %8 = vector.load %arg4[%c0_6, %c0_7] : memref<32x128xf32, #tpu.memory_space<vmem>>, vector<32x128xf32>
    tpu.vector_store %arg4[%c0_6, %c0_7], %7 {strides = array<i32>} : memref<32x128xf32, #tpu.memory_space<vmem>>, vector<32x128xf32>,
    return
  }
  func.func @transform_0(%arg0: i32) -> (i32, i32) {
    %c0_i32 = arith.constant 0 : i32
    %c0_i32_0 = arith.constant 0 : i32
    return %arg0, %c0_i32 : i32, i32
  }
  func.func @transform_1(%arg0: i32) -> (i32, i32) {
    %c0_i32 = arith.constant 0 : i32
    %c0_i32_0 = arith.constant 0 : i32
    %c0_i32_1 = arith.constant 0 : i32
    return %c0_i32, %c0_i32_0 : i32, i32
  }
  func.func @transform_2(%arg0: i32) -> (i32, i32) {
    %c0_i32 = arith.constant 0 : i32
    %c0_i32_0 = arith.constant 0 : i32
    %c0_i32_1 = arith.constant 0 : i32
    return %c0_i32, %c0_i32_0 : i32, i32
  }
  func.func @transform_3(%arg0: i32) -> (i32, i32) {
    %c0_i32 = arith.constant 0 : i32
    %c0_i32_0 = arith.constant 0 : i32
    return %arg0, %c0_i32 : i32, i32
  }
}

module attributes {stable_mosaic.version = 11 : i64} {
  func.func @_linear_relu_kernel(%arg0: i32, %arg1: memref<32x32xf32, #tpu.memory_space<vmem>>, %arg2: memref<32x128xf32, #tpu.memory_space<vmem>>, %arg3: memref<1x128xf32, #tpu.memory_space<vmem>>, %arg4: memref<32x128xf32, #tpu.memory_space<vmem>>) attributes {dimension_semantics = [#tpu.dimension_semantics<parallel>], iteration_bounds = array<i64: 2>, scalar_prefetch = 0 : i64, scratch_operands = 0 : i64, tpu.core_type = #tpu.core_type<tc>, window_params = [{transform_indices = @transform_0, window_bounds = array<i64: 32, 32>}, {pipeline_mode = #tpu.pipeline_mode<synchronous>, transform_indices = @transform_1, window_bounds = array<i64: 32, 128>}, {pipeline_mode = #tpu.pipeline_mode<synchronous>, transform_indices = @transform_2, window_bounds = array<i64: 1, 128>}, {transform_indices = @transform_3, window_bounds = array<i64: 32, 128>}]} {
    %c0 = arith.constant 0 : index
    %c0_0 = arith.constant 0 : index
    %0 = vector.load %arg1[%c0, %c0_0] : memref<32x32xf32, #tpu.memory_space<vmem>>, vector<32x32xf32>
    %c0_1 = arith.constant 0 : index
    %c0_2 = arith.constant 0 : index
    %1 = vector.load %arg2[%c0_1, %c0_2] : memref<32x128xf32, #tpu.memory_space<vmem>>, vector<32x128xf32>
    %cst = arith.constant dense<0.000000e+00> : vector<32x128xf32>
    %2 = tpu.matmul %0, %1, %cst {dimension_numbers = #tpu.dot_dimension_numbers<[1], [0], [0], [1], [0, 0, 1, 1], [], []>} : vector<32x32xf32>, vector<32x128xf32>, vector<32x128xf32> -> vector<32x128xf32>
    %c0_3 = arith.constant 0 : index
    %c0_4 = arith.constant 0 : index
    %3 = vector.load %arg3[%c0_3, %c0_4] : memref<1x128xf32, #tpu.memory_space<vmem>>, vector<1x128xf32>
    %4 = vector.broadcast %3 : vector<1x128xf32> to vector<32x128xf32>
    %5 = arith.addf %2, %4 : vector<32x128xf32>
    %cst_5 = arith.constant 0.000000e+00 : f32
    %6 = vector.broadcast %cst_5 : f32 to vector<32x128xf32>
    %7 = arith.maximumf %5, %6 : vector<32x128xf32>
    %c0_6 = arith.constant 0 : index
    %c0_7 = arith.constant 0 : index
    %8 = vector.load %arg4[%c0_6, %c0_7] : memref<32x128xf32, #tpu.memory_space<vmem>>, vector<32x128xf32>
    tpu.vector_store %arg4[%c0_6, %c0_7], %7 {strides = array<i32>} : memref<32x128xf32, #tpu.memory_space<vmem>>, vector<32x128xf32>,
    return
  }
  func.func @transform_0(%arg0: i32) -> (i32, i32) {
    %c0_i32 = arith.constant 0 : i32
    %c0_i32_0 = arith.constant 0 : i32
    return %arg0, %c0_i32 : i32, i32
  }
  func.func @transform_1(%arg0: i32) -> (i32, i32) {
    %c0_i32 = arith.constant 0 : i32
    %c0_i32_0 = arith.constant 0 : i32
    %c0_i32_1 = arith.constant 0 : i32
    return %c0_i32, %c0_i32_0 : i32, i32
  }
  func.func @transform_2(%arg0: i32) -> (i32, i32) {
    %c0_i32 = arith.constant 0 : i32
    %c0_i32_0 = arith.constant 0 : i32
    %c0_i32_1 = arith.constant 0 : i32
    return %c0_i32, %c0_i32_0 : i32, i32
  }
  func.func @transform_3(%arg0: i32) -> (i32, i32) {
    %c0_i32 = arith.constant 0 : i32
    %c0_i32_0 = arith.constant 0 : i32
    return %arg0, %c0_i32 : i32, i32
  }
}

</mosaic_0001>

<bundles_post_ra>
// kernel: tpu_custom_call.1
= control target key start
LH: loop header
LB: loop body
LE: loop exit
PB: predicated region body
PF: predicated region fallthrough
CT: control target
= control target key end

     0   :  { %8 = vsyncpa [#allocation3], 0  ;;  %s666_s0 = inlined_call_operand.vmem [shape: f32[64,32], index: 0, kind: input, shape index: {}]   ;;  %s667_s1 = inlined_call_operand.vmem [shape: f32[32,128], index: 1, kind: input, shape index: {}]   ;;  %s668_s2 = inlined_call_operand.vmem [shape: f32[1,128], index: 2, kind: input, shape index: {}]   ;;  %s669_s3 = inlined_call_operand.hbm [shape: f32[64,128], index: 3, kind: output, shape index: {}]  }
   0x1   :  { %10 = vsyncpa [#allocation3 + $0x1], 0  ;;  %s549_s12 = smov 0   ;;  %s551_s13 = smov 0  }
   0x2   :  { %s553_s14 = smov 0   ;;  %s555_s15 = smov 0  }
   0x3 LB: > { %s570_s16 = sadd.s32 4294967295, %s524_s15   ;;  %s369_s17 = sadd.s32 4294967294, %s524_s15   ;;  %s524_s15 = sphi %s555_s15, %s675_s15   ;;  %s520_s14 = sphi %s553_s14, %s674_s14   ;;  %s516_s13 = sphi %s551_s13, %s673_s13   ;;  %s512_s12 = sphi %s549_s12, %s672_s12  }
   0x4   : > { %s574_s18 = sadd.s32 1, %s524_s15   ;;  %s91_s19 = sadd.s32 1, %s520_s14 }
   0x5   : > { %s88_s20 = ssub.s32 %s524_s15, %s574_s18  ;;  %p101_p0 = scmp.ne.s32.totalorder %s520_s14, %s516_s13 }
   0x6   : > { %p89_p1 = scmp.eq.s32.totalorder %s88_s20, 0  ;;  %p102_p2 = scmp.eq.s32.totalorder %s570_s16, 1 }
   0x7   : > { %p107_p3 = scmp.ne.s32.totalorder %s516_s13, %s512_s12  ;;  %p108_p4 = scmp.eq.s32.totalorder %s369_s17, 1 }
   0x8   : > { %s585_s21 = scalar_select %p89_p1, %s520_s14, %s91_s19  }
   0x9   : > { %p587_p5 = por %p102_p2, %p101_p0  ;;  %p591_p6 = por %p108_p4, %p107_p3 }
   0xa   : > { %p372_p7 = scmp.ge.s32.totalorder %s524_s15, 1  ;;  %p141_p8 = scmp.lt.s32.totalorder %s524_s15, 3 }
   0xc   : > { %p142_p9 = pnand %p372_p7, %p141_p8 }
   0xd   : > { %v176_v0 = vld [vmem:[%s667_s1] sm:$0xff] (!%p142_p9)  ;;  %v177_v1 = vld [vmem:[%s667_s1 + $0x8] sm:$0xff] (!%p142_p9)  ;;  %v178_v2 = vld [vmem:[%s667_s1 + $0x10] sm:$0xff] (!%p142_p9)  ;;  %s374_s30 = sshll.u32 (!%p142_p9), %s570_s16, 2  ;;  %vm187_vm0 = vcmask (!%p142_p9), 261120   ;;  %s162_s10 = sand.u32 (!%p142_p9), 1, %s516_s13  }
   0xe   : > { %145 = sbr.rel (%p142_p9) target bundleno = 258 (0x102), region = 32  ;;  %v409_v3 = vpack.c.bf16 (!%p142_p9), %v177_v1, %v176_v0  ;;  %v179_v4 = vld [vmem:[%s667_s1 + $0x18] sm:$0xff] (!%p142_p9)  ;;  %p166_p10 = scmp.lt.s32.totalorder (!%p142_p9), %s374_s30, 7  ;;  %v376_v10 = vld [vmem:[%s668_s2] ss:$0 sm:$0xff] (!%p142_p9) }
   0xf   : > { %v413_v5 = vpack.c.bf16 (!%p142_p9), %v179_v4, %v178_v2  ;;  %s373_s11 = sshll.u32 (!%p142_p9), %s162_s10, 5  ;;  %s386_s25 = sshll.u32 (!%p142_p9), %s570_s16, 9 }
  0x10   : > { %410 = vmatprep.subr.bf16.mxu0 (!%p142_p9), %v409_v3  ;;  %417 = vmatprep.subr.bf16.mxu1 (!%p142_p9), %v409_v3  ;;  %s164_s20 = scalar_lea.vmem (!%p142_p9), [#allocation2], %s373_s11  ;;  %s623_s28 = scalar_lea.hbm (!%p142_p9), %s669_s3, %s386_s25 }
  0x11   : > { %412 = vmatpush3.bf16.msra.mxu0 (!%p142_p9), %v409_v3  ;;  %419 = vmatpush3.bf16.msra.mxu1 (!%p142_p9), %v409_v3  ;;  %s307_s24 = sshll.u32 (!%p142_p9), %s164_s20, 4  ;;  %s625_s16 = scalar_lea.sflag (!%p142_p9), [#allocation3], %s162_s10  ;;  %s618_s24 = int_to_ptr.vmem [resolvable:$true] %s307_s24 }
  0x12   : > { %414 = vmatprep.subr.bf16.mxu0 (!%p142_p9), %v413_v5  ;;  %418 = vmatprep.subr.bf16.mxu1 (!%p142_p9), %v413_v5  ;;  %s462_s29 = scalar_lea.vmem (!%p142_p9), %s618_s24, 512 }
  0x13   : > { %p463_p11 = scmp.ne.s32.totalorder (!%p142_p9), %s618_s24, %s462_s29 }
  0x15   : > { %s677_s30 = smov (!%p166_p10, %s374_s30), 7  ;;  %416 = vmatpush3.bf16.msra.mxu0 %v413_v5  ;;  %420 = vmatpush3.bf16.msra.mxu1 %v413_v5  ;;  %p464_p12 = pnand %p463_p11, %p587_p5 }
  0x16   : > { %s375_s6 = sshll.u32 %s677_s30, 3  ;;  %s526_s30 = smov [#allocation2]  }
  0x17   : > { %s169_s9 = scalar_lea.vmem %s666_s0, %s375_s6  ;;  %p465_p13 = pneg %p464_p12 }
  0x18   : > { %v172_v6 = vld [vmem:[%s169_s9] sm:$0xff]  ;;  %v174_v7 = vld [vmem:[%s169_s9 + $0x10] sm:$0xff]  ;;  %v173_v8 = vld [vmem:[%s169_s9 + $0x8] sm:$0xff]  ;;  %s466_s4 = sshll.u32 %s526_s30, 4  ;;  %s467_s4 = int_to_ptr.vmem [resolvable:$false] %s466_s4 }
  0x19   : > { %v175_v9 = vld [vmem:[%s169_s9 + $0x18] sm:$0xff]  ;;  %403 = vmatprep.mubr.msk.f32.mxu0 %vm187_vm0, %v172_v6  ;;  %406 = vmatprep.mubr.msk.f32.mxu1 %vm187_vm0, %v174_v7  ;;  %s468_s5 = scalar_lea.vmem %s467_s4, 1024  ;;  %p469_p0 = scmp.lt.s32.totalorder %s618_s24, %s467_s4 }
  0x1a   : > { %404 = vmatmul.mubr.msk.f32.vlgmr.msra.gmra.mrb[0].mxu0 %vm187_vm0, %v173_v8  ;;  %407 = vmatmul.mubr.msk.f32.vlgmr.msra.gmra.mrb[0].mxu1 %vm187_vm0, %v175_v9  ;;  %p470_p1 = scmp.lt.s32.totalorder %s468_s5, %s462_s29 }
  0x1c   : > { %p471_p2 = por %p470_p1, %p469_p0 }
  0x1e   : > { %p472_p3 = pnand %p471_p2, %p465_p13 }
  0xed   : > { %v405_v11 = vpop.f32.mrb[0].mxu0  ;;  %v408_v12 = vpop.f32.mrb[0].mxu1 }
  0xee   : > { %v272_v13 = vadd.f32 %v405_v11, %v376_v10  ;;  %v282_v14 = vadd.f32 %v408_v12, %v376_v10  ;;  %v266_v15 = vpop.f32.mrb[1].mxu0  ;;  %v276_v16 = vpop.f32.mrb[1].mxu1 }
  0xef   : > { %v267_v17 = vadd.f32 %v376_v10, %v266_v15  ;;  %v277_v18 = vadd.f32 %v376_v10, %v276_v16 }
  0xf0   : > { %v286_v19 = vmax.f32 %v272_v13, 0.0  ;;  %v288_v20 = vmax.f32 %v282_v14, 0.0 }
  0xf1   : > { %v285_v21 = vmax.f32 %v267_v17, 0.0  ;;  %v287_v22 = vmax.f32 %v277_v18, 0.0 }
  0xf2   : > { %290 = vst [vmem:[%s164_s20 + $0x8] sm:$0xff] %v286_v19  ;;  %292 = vst [vmem:[%s164_s20 + $0x18] sm:$0xff] %v288_v20 }
  0xf3   : > { %289 = vst [vmem:[%s164_s20] sm:$0xff] %v285_v21  ;;  %291 = vst [vmem:[%s164_s20 + $0x10] sm:$0xff] %v287_v22 }
  0xf4   : > { %475 = shalt.err (!%p472_p3)
}
  0xf5   : > { %s476_s6 = scalar_lea.hbm %s623_s28, 512  ;;  %s480_s9 = scalar_lea.hbm %s669_s3, 1024 }
  0xf6   : > { %p477_p4 = scmp.ne.s32.totalorder %s623_s28, %s476_s6  ;;  %p481_p9 = scmp.lt.u32.totalorder %s623_s28, %s669_s3 }
  0xf7   : > { %p482_p10 = scmp.lt.u32.totalorder %s480_s9, %s476_s6  ;;  %p484_p12 = scmp.lt.u32.totalorder %s476_s6, %s623_s28 }
  0xf8   : > { %p478_p7 = pnand %p477_p4, %p587_p5 }
  0xf9   : > { %p483_p11 = por %p482_p10, %p481_p9 }
  0xfa   : > { %p479_p8 = pneg %p478_p7 }
  0xfb   : > { %p485_p13 = por %p484_p12, %p483_p11 }
  0xfd   : > { %p486_p0 = pnand %p485_p13, %p479_p8 }
  0xff   : > { %489 = shalt.err (!%p486_p0)
}
 0x100   : > { %s527_s17 = smov 128   ;;  %s528_s19 = smov 8  }
 0x101   : > { %421 = dma.vmem_to_hbm [thread:$0]  (%p587_p5), %s618_s24, 512, %s623_s28, %s625_s16, %s527_s17, %s527_s17, %s528_s19  }
 0x102 PF: > { %p427_p1 = scmp.ge.s32.totalorder %s524_s15, 2  ;;  %s322_s20 = sand.u32 1, %s512_s12  }
 0x103   : > { %s323_s25 = scalar_lea.sflag [#allocation3], %s322_s20 }
 0x104   : > { %p424_p2 = pnand %p427_p1, %p591_p6 }
 0x106   : > { %507 = dma.done.wait (!%p424_p2), %s323_s25, 512  }
 0x107   : > { %509 = vsyncadd (!%p424_p2), %s323_s25, 4294966784  ;;  %p13_p3 = scmp.ge.s32.totalorder %s574_s18, 4   ;;  %s672_s12 = smov %s516_s13 }
 0x108   : > { %s673_s13 = smov %s520_s14  ;;  %s674_s14 = smov %s585_s21 }
 0x109   : > { %s675_s15 = smov %s574_s18  ;;  %15 = sbr.rel (!%p13_p3) target bundleno = 3 (0x3), region = 67 }
 0x110   :  { %328 = vsyncpa [#allocation3], 1 }
 0x111   :  { %330 = vsyncpa [#allocation3 + $0x1], 1 }

// kernel: tpu_custom_call.1
= control target key start
LH: loop header
LB: loop body
LE: loop exit
PB: predicated region body
PF: predicated region fallthrough
CT: control target
= control target key end

     0   :  { %8 = vsyncpa [#allocation3], 0  ;;  %s666_s0 = inlined_call_operand.vmem [shape: f32[64,32], index: 0, kind: input, shape index: {}]   ;;  %s667_s1 = inlined_call_operand.vmem [shape: f32[32,128], index: 1, kind: input, shape index: {}]   ;;  %s668_s2 = inlined_call_operand.vmem [shape: f32[1,128], index: 2, kind: input, shape index: {}]   ;;  %s669_s3 = inlined_call_operand.hbm [shape: f32[64,128], index: 3, kind: output, shape index: {}]  }
   0x1   :  { %10 = vsyncpa [#allocation3 + $0x1], 0  ;;  %s549_s12 = smov 0   ;;  %s551_s13 = smov 0  }
   0x2   :  { %s553_s14 = smov 0   ;;  %s555_s15 = smov 0  }
   0x3 LB: > { %s570_s16 = sadd.s32 4294967295, %s524_s15   ;;  %s369_s17 = sadd.s32 4294967294, %s524_s15   ;;  %s524_s15 = sphi %s555_s15, %s675_s15   ;;  %s520_s14 = sphi %s553_s14, %s674_s14   ;;  %s516_s13 = sphi %s551_s13, %s673_s13   ;;  %s512_s12 = sphi %s549_s12, %s672_s12  }
   0x4   : > { %s574_s18 = sadd.s32 1, %s524_s15   ;;  %s91_s19 = sadd.s32 1, %s520_s14 }
   0x5   : > { %s88_s20 = ssub.s32 %s524_s15, %s574_s18  ;;  %p101_p0 = scmp.ne.s32.totalorder %s520_s14, %s516_s13 }
   0x6   : > { %p89_p1 = scmp.eq.s32.totalorder %s88_s20, 0  ;;  %p102_p2 = scmp.eq.s32.totalorder %s570_s16, 1 }
   0x7   : > { %p107_p3 = scmp.ne.s32.totalorder %s516_s13, %s512_s12  ;;  %p108_p4 = scmp.eq.s32.totalorder %s369_s17, 1 }
   0x8   : > { %s585_s21 = scalar_select %p89_p1, %s520_s14, %s91_s19  }
   0x9   : > { %p587_p5 = por %p102_p2, %p101_p0  ;;  %p591_p6 = por %p108_p4, %p107_p3 }
   0xa   : > { %p372_p7 = scmp.ge.s32.totalorder %s524_s15, 1  ;;  %p141_p8 = scmp.lt.s32.totalorder %s524_s15, 3 }
   0xc   : > { %p142_p9 = pnand %p372_p7, %p141_p8 }
   0xd   : > { %v176_v0 = vld [vmem:[%s667_s1] sm:$0xff] (!%p142_p9)  ;;  %v177_v1 = vld [vmem:[%s667_s1 + $0x8] sm:$0xff] (!%p142_p9)  ;;  %v178_v2 = vld [vmem:[%s667_s1 + $0x10] sm:$0xff] (!%p142_p9)  ;;  %s374_s30 = sshll.u32 (!%p142_p9), %s570_s16, 2  ;;  %vm187_vm0 = vcmask (!%p142_p9), 261120   ;;  %s162_s10 = sand.u32 (!%p142_p9), 1, %s516_s13  }
   0xe   : > { %145 = sbr.rel (%p142_p9) target bundleno = 258 (0x102), region = 32  ;;  %v409_v3 = vpack.c.bf16 (!%p142_p9), %v177_v1, %v176_v0  ;;  %v179_v4 = vld [vmem:[%s667_s1 + $0x18] sm:$0xff] (!%p142_p9)  ;;  %p166_p10 = scmp.lt.s32.totalorder (!%p142_p9), %s374_s30, 7  ;;  %v376_v10 = vld [vmem:[%s668_s2] ss:$0 sm:$0xff] (!%p142_p9) }
   0xf   : > { %v413_v5 = vpack.c.bf16 (!%p142_p9), %v179_v4, %v178_v2  ;;  %s373_s11 = sshll.u32 (!%p142_p9), %s162_s10, 5  ;;  %s386_s25 = sshll.u32 (!%p142_p9), %s570_s16, 9 }
  0x10   : > { %410 = vmatprep.subr.bf16.mxu0 (!%p142_p9), %v409_v3  ;;  %417 = vmatprep.subr.bf16.mxu1 (!%p142_p9), %v409_v3  ;;  %s164_s20 = scalar_lea.vmem (!%p142_p9), [#allocation2], %s373_s11  ;;  %s623_s28 = scalar_lea.hbm (!%p142_p9), %s669_s3, %s386_s25 }
  0x11   : > { %412 = vmatpush3.bf16.msra.mxu0 (!%p142_p9), %v409_v3  ;;  %419 = vmatpush3.bf16.msra.mxu1 (!%p142_p9), %v409_v3  ;;  %s307_s24 = sshll.u32 (!%p142_p9), %s164_s20, 4  ;;  %s625_s16 = scalar_lea.sflag (!%p142_p9), [#allocation3], %s162_s10  ;;  %s618_s24 = int_to_ptr.vmem [resolvable:$true] %s307_s24 }
  0x12   : > { %414 = vmatprep.subr.bf16.mxu0 (!%p142_p9), %v413_v5  ;;  %418 = vmatprep.subr.bf16.mxu1 (!%p142_p9), %v413_v5  ;;  %s462_s29 = scalar_lea.vmem (!%p142_p9), %s618_s24, 512 }
  0x13   : > { %p463_p11 = scmp.ne.s32.totalorder (!%p142_p9), %s618_s24, %s462_s29 }
  0x15   : > { %s677_s30 = smov (!%p166_p10, %s374_s30), 7  ;;  %416 = vmatpush3.bf16.msra.mxu0 %v413_v5  ;;  %420 = vmatpush3.bf16.msra.mxu1 %v413_v5  ;;  %p464_p12 = pnand %p463_p11, %p587_p5 }
  0x16   : > { %s375_s6 = sshll.u32 %s677_s30, 3  ;;  %s526_s30 = smov [#allocation2]  }
  0x17   : > { %s169_s9 = scalar_lea.vmem %s666_s0, %s375_s6  ;;  %p465_p13 = pneg %p464_p12 }
  0x18   : > { %v172_v6 = vld [vmem:[%s169_s9] sm:$0xff]  ;;  %v174_v7 = vld [vmem:[%s169_s9 + $0x10] sm:$0xff]  ;;  %v173_v8 = vld [vmem:[%s169_s9 + $0x8] sm:$0xff]  ;;  %s466_s4 = sshll.u32 %s526_s30, 4  ;;  %s467_s4 = int_to_ptr.vmem [resolvable:$false] %s466_s4 }
  0x19   : > { %v175_v9 = vld [vmem:[%s169_s9 + $0x18] sm:$0xff]  ;;  %403 = vmatprep.mubr.msk.f32.mxu0 %vm187_vm0, %v172_v6  ;;  %406 = vmatprep.mubr.msk.f32.mxu1 %vm187_vm0, %v174_v7  ;;  %s468_s5 = scalar_lea.vmem %s467_s4, 1024  ;;  %p469_p0 = scmp.lt.s32.totalorder %s618_s24, %s467_s4 }
  0x1a   : > { %404 = vmatmul.mubr.msk.f32.vlgmr.msra.gmra.mrb[0].mxu0 %vm187_vm0, %v173_v8  ;;  %407 = vmatmul.mubr.msk.f32.vlgmr.msra.gmra.mrb[0].mxu1 %vm187_vm0, %v175_v9  ;;  %p470_p1 = scmp.lt.s32.totalorder %s468_s5, %s462_s29 }
  0x1c   : > { %p471_p2 = por %p470_p1, %p469_p0 }
  0x1e   : > { %p472_p3 = pnand %p471_p2, %p465_p13 }
  0xed   : > { %v405_v11 = vpop.f32.mrb[0].mxu0  ;;  %v408_v12 = vpop.f32.mrb[0].mxu1 }
  0xee   : > { %v272_v13 = vadd.f32 %v405_v11, %v376_v10  ;;  %v282_v14 = vadd.f32 %v408_v12, %v376_v10  ;;  %v266_v15 = vpop.f32.mrb[1].mxu0  ;;  %v276_v16 = vpop.f32.mrb[1].mxu1 }
  0xef   : > { %v267_v17 = vadd.f32 %v376_v10, %v266_v15  ;;  %v277_v18 = vadd.f32 %v376_v10, %v276_v16 }
  0xf0   : > { %v286_v19 = vmax.f32 %v272_v13, 0.0  ;;  %v288_v20 = vmax.f32 %v282_v14, 0.0 }
  0xf1   : > { %v285_v21 = vmax.f32 %v267_v17, 0.0  ;;  %v287_v22 = vmax.f32 %v277_v18, 0.0 }
  0xf2   : > { %290 = vst [vmem:[%s164_s20 + $0x8] sm:$0xff] %v286_v19  ;;  %292 = vst [vmem:[%s164_s20 + $0x18] sm:$0xff] %v288_v20 }
  0xf3   : > { %289 = vst [vmem:[%s164_s20] sm:$0xff] %v285_v21  ;;  %291 = vst [vmem:[%s164_s20 + $0x10] sm:$0xff] %v287_v22 }
  0xf4   : > { %475 = shalt.err (!%p472_p3)
}
  0xf5   : > { %s476_s6 = scalar_lea.hbm %s623_s28, 512  ;;  %s480_s9 = scalar_lea.hbm %s669_s3, 1024 }
  0xf6   : > { %p477_p4 = scmp.ne.s32.totalorder %s623_s28, %s476_s6  ;;  %p481_p9 = scmp.lt.u32.totalorder %s623_s28, %s669_s3 }
  0xf7   : > { %p482_p10 = scmp.lt.u32.totalorder %s480_s9, %s476_s6  ;;  %p484_p12 = scmp.lt.u32.totalorder %s476_s6, %s623_s28 }
  0xf8   : > { %p478_p7 = pnand %p477_p4, %p587_p5 }
  0xf9   : > { %p483_p11 = por %p482_p10, %p481_p9 }
  0xfa   : > { %p479_p8 = pneg %p478_p7 }
  0xfb   : > { %p485_p13 = por %p484_p12, %p483_p11 }
  0xfd   : > { %p486_p0 = pnand %p485_p13, %p479_p8 }
  0xff   : > { %489 = shalt.err (!%p486_p0)
}
 0x100   : > { %s527_s17 = smov 128   ;;  %s528_s19 = smov 8  }
 0x101   : > { %421 = dma.vmem_to_hbm [thread:$0]  (%p587_p5), %s618_s24, 512, %s623_s28, %s625_s16, %s527_s17, %s527_s17, %s528_s19  }
 0x102 PF: > { %p427_p1 = scmp.ge.s32.totalorder %s524_s15, 2  ;;  %s322_s20 = sand.u32 1, %s512_s12  }
 0x103   : > { %s323_s25 = scalar_lea.sflag [#allocation3], %s322_s20 }
 0x104   : > { %p424_p2 = pnand %p427_p1, %p591_p6 }
 0x106   : > { %507 = dma.done.wait (!%p424_p2), %s323_s25, 512  }
 0x107   : > { %509 = vsyncadd (!%p424_p2), %s323_s25, 4294966784  ;;  %p13_p3 = scmp.ge.s32.totalorder %s574_s18, 4   ;;  %s672_s12 = smov %s516_s13 }
 0x108   : > { %s673_s13 = smov %s520_s14  ;;  %s674_s14 = smov %s585_s21 }
 0x109   : > { %s675_s15 = smov %s574_s18  ;;  %15 = sbr.rel (!%p13_p3) target bundleno = 3 (0x3), region = 67 }
 0x110   :  { %328 = vsyncpa [#allocation3], 1 }
 0x111   :  { %330 = vsyncpa [#allocation3 + $0x1], 1 }

</bundles_post_ra>
